<compile_context>
chip_gen: v5e
topology: v5e:2x2
jax: 0.10.0
libtpu: 0.0.40
codegen_flags: <defaults>
</compile_context>

<pallas_src>
import numpy as np
import jax
import jax.numpy as jnp
from jax.experimental import pallas as pl
from jax.experimental.pallas import tpu as pltpu


# ----------------------------------------------------------------------------
# Fused kernel: FPN add + halo + phase-packed (3x3 conv ∘ 4x nearest upsample)
# ----------------------------------------------------------------------------
def seghead_fused_kernel(c2_ref, u3_ref, u4_ref, u5_ref, w_ref, b_ref,
                         out_ref, p2pad_ref):
    # c2/u3/u4/u5 : (1, H2, W2, Cin)   already-upsampled FPN features
    # w_ref       : (9*Cin, 16*Cout)   phase-packed weights (tap-major, Cin-minor)
    # b_ref       : (1, 16*Cout)       bias replicated over the 16 phases
    # out_ref     : (1, H2, W2, 16*Cout)  lane-dense packed output
    # p2pad_ref   : VMEM scratch (H2+2, W2+2, Cin)
    _, h2, w2, pcout = out_ref.shape
    cin = c2_ref.shape[3]

    # --- 4-way feature fusion (VPU adds, everything already in VMEM) ---
    p2 = c2_ref[0] + u3_ref[0] + u4_ref[0] + u5_ref[0]            # (H2, W2, Cin)

    # --- 1-pixel zero halo around P2, kept in VMEM (no HBM round trip) ---
    p2pad_ref[...] = jnp.zeros_like(p2pad_ref)
    p2pad_ref[pl.ds(1, h2), pl.ds(1, w2), :] = p2

    # --- phase-packed conv: 9 shifted taps, each an (H2*W2, Cin)x(Cin, 16*Cout)
    #     MXU matmul accumulated in f32.  Output width 128 -> full MXU width,
    #     unmasked lane-dense stores.
    acc = jnp.zeros((h2 * w2, pcout), jnp.float32)
    for t in range(9):                       # unrolled; taps consumed immediately
        dh, dw = divmod(t, 3)
        tap = p2pad_ref[pl.ds(dh, h2), pl.ds(dw, w2), :].reshape(h2 * w2, cin)
        acc = acc + jnp.dot(tap, w_ref[pl.ds(t * cin, cin), :],
                            preferred_element_type=jnp.float32)
    acc = acc + b_ref[...]
    out_ref[...] = acc.reshape(1, h2, w2, pcout).astype(out_ref.dtype)


# ----------------------------------------------------------------------------
# Wrapper-side helpers (tiny XLA glue: layout + weight packing only)
# ----------------------------------------------------------------------------
def _nearest_resize_nhwc(src, H, W):
    """PyTorch F.interpolate(mode='nearest') to (H, W), NHWC."""
    n, h, w, c = src.shape
    if H % h == 0 and W % w == 0:
        fh, fw = H // h, W // w          # exact power-of-two FPN case: pure repeat
        out = jnp.broadcast_to(src[:, :, None, :, None, :], (n, h, fh, w, fw, c))
        return out.reshape(n, H, W, c)
    hi = (jnp.arange(H) * h) // H        # general nearest rule: floor(dst*in/out)
    wi = (jnp.arange(W) * w) // W
    return src[:, hi][:, :, wi]


def _pack_phase_weights(w, b):
    """Fold the 4x nearest upsample into the 3x3 conv weights.

    w: (3,3,Cin,Cout) HWIO, b: (Cout,)
    Returns wp: (9*Cin, 16*Cout) with rows ordered (dh, dw, ci) and columns
    ordered (py, px, co), and bp: (1, 16*Cout).
    For output pixel (4i+py, 4j+px), conv tap (kh, kw) reads P2 neighbour
    (dh, dw) = ((py+kh-1)//4, (px+kw-1)//4) in {-1,0,1}^2 (zero halo handles
    the image border exactly).
    """
    _, _, cin, cout = w.shape
    m = np.zeros((3, 3, 4, 4, 3, 3), np.float32)    # [kh, kw, py, px, dh+1, dw+1]
    for py in range(4):
        for px in range(4):
            for kh in range(3):
                for kw in range(3):
                    dh = (py + kh - 1) // 4 + 1
                    dw = (px + kw - 1) // 4 + 1
                    m[kh, kw, py, px, dh, dw] = 1.0
    # wp[dh, dw, ci, py, px, co] = sum_{kh,kw} m[...] * w[kh, kw, ci, co]
    wp = jnp.einsum("hwpqde,hwio->deipqo", jnp.asarray(m, w.dtype), w)
    wp = wp.reshape(9 * cin, 16 * cout)
    bp = jnp.tile(b, 16).reshape(1, 16 * cout)
    return wp, bp


# ----------------------------------------------------------------------------
# Module forward (NCHW in / NCHW out, matching the PyTorch module)
# ----------------------------------------------------------------------------
def seg_head_w_fusion_forward(inputs_nchw, cat_nchw, w_pred, b_pred):
    P3, P4, P5 = (jnp.transpose(p, (0, 2, 3, 1)) for p in inputs_nchw)
    C2 = jnp.transpose(cat_nchw, (0, 2, 3, 1))
    N, H2, W2, Cin = C2.shape
    Cout = w_pred.shape[-1]
    PC = 16 * Cout                                   # packed channels (=128 here)

    # Power-of-two nearest upsample of the small FPN maps (broadcast+reshape,
    # no gathers; ~32 KiB each — negligible next to the old 2 MiB intermediates).
    u3 = _nearest_resize_nhwc(P3, H2, W2)
    u4 = _nearest_resize_nhwc(P4, H2, W2)
    u5 = _nearest_resize_nhwc(P5, H2, W2)

    wp, bp = _pack_phase_weights(w_pred, b_pred)     # (9*Cin, PC), (1, PC)

    img_spec = pl.BlockSpec((1, H2, W2, Cin), lambda n: (n, 0, 0, 0))
    packed = pl.pallas_call(
        seghead_fused_kernel,
        out_shape=jax.ShapeDtypeStruct((N, H2, W2, PC), jnp.float32),
        grid=(N,),
        in_specs=[img_spec, img_spec, img_spec, img_spec,
                  pl.BlockSpec((9 * Cin, PC), lambda n: (0, 0)),
                  pl.BlockSpec((1, PC), lambda n: (0, 0))],
        out_specs=pl.BlockSpec((1, H2, W2, PC), lambda n: (n, 0, 0, 0)),
        scratch_shapes=[pltpu.VMEM((H2 + 2, W2 + 2, Cin), jnp.float32)],
        compiler_params=pltpu.CompilerParams(dimension_semantics=("parallel",)),
    )(C2, u3, u4, u5, wp, bp)

    # Depth-to-space the 16 phases straight into NCHW:
    #   packed[n, i, j, py, px, co] -> out[n, co, 4i+py, 4j+px]
    out = packed.reshape(N, H2, W2, 4, 4, Cout)
    out = out.transpose(0, 5, 1, 3, 2, 4).reshape(N, Cout, 4 * H2, 4 * W2)

    # NOTE: self.seg_conv(P2) and self.softmax are dead code in the reference
    # forward (result immediately overwritten / never used) -> not executed.
    return [out]


if __name__ == "__main__":
    key = jax.random.PRNGKey(0)
    N, Cin, Cout = 2, 32, 8          # in_channel=32 (GroupNorm(32, C) valid)
    H2 = W2 = 16                     # C2 spatial size; FPN levels are /2, /4, /8
    ks = jax.random.split(key, 6)

    C2 = jax.random.normal(ks[0], (N, Cin, H2, W2), jnp.float32)
    P3 = jax.random.normal(ks[1], (N, Cin, 8, 8), jnp.float32)
    P4 = jax.random.normal(ks[2], (N, Cin, 4, 4), jnp.float32)
    P5 = jax.random.normal(ks[3], (N, Cin, 2, 2), jnp.float32)

    # seg_pred = Conv2d(Cin, Cout, 3, padding=1): deterministic uniform init
    fan_in = Cin * 9
    bound = 1.0 / (fan_in ** 0.5)
    w_pred = jax.random.uniform(ks[4], (3, 3, Cin, Cout), jnp.float32, -bound, bound)
    b_pred = jax.random.uniform(ks[5], (Cout,), jnp.float32, -bound, bound)

    fwd = jax.jit(seg_head_w_fusion_forward)
    outs = fwd((P3, P4, P5), C2, w_pred, b_pred)
    out = jax.block_until_ready(outs[0])
    assert out.shape == (N, Cout, H2 * 4, W2 * 4)

    # Pure-JAX reference check (NCHW), identical math to the PyTorch module.
    def up_ref(src, H, W):
        _, _, h, w = src.shape
        hi = (jnp.arange(H) * h) // H
        wi = (jnp.arange(W) * w) // W
        return src[:, :, hi][:, :, :, wi]

    P2_ref = C2 + up_ref(P3, H2, W2) + up_ref(P4, H2, W2) + up_ref(P5, H2, W2)
    P2_up_ref = jnp.repeat(jnp.repeat(P2_ref, 4, axis=2), 4, axis=3)
    ref = jax.lax.conv_general_dilated(
        P2_up_ref, jnp.transpose(w_pred, (3, 2, 0, 1)),
        window_strides=(1, 1), padding="SAME",
        dimension_numbers=("NCHW", "OIHW", "NCHW"),
        precision=jax.lax.Precision.HIGHEST,
    ) + b_pred.reshape(1, Cout, 1, 1)

    assert jnp.allclose(out, ref, atol=1e-4, rtol=1e-4), "mismatch vs reference"
    print("KERNEL_OK")
</pallas_src>

<mosaic_0001>
module attributes {stable_mosaic.version = 11 : i64} {
  func.func @seghead_fused_kernel(%arg0: i32, %arg1: memref<1x16x16x32xf32, #tpu.memory_space<vmem>>, %arg2: memref<1x16x16x32xf32, #tpu.memory_space<vmem>>, %arg3: memref<1x16x16x32xf32, #tpu.memory_space<vmem>>, %arg4: memref<1x16x16x32xf32, #tpu.memory_space<vmem>>, %arg5: memref<288x128xf32, #tpu.memory_space<vmem>>, %arg6: memref<1x128xf32, #tpu.memory_space<vmem>>, %arg7: memref<1x16x16x128xf32, #tpu.memory_space<vmem>>, %arg8: memref<18x18x32xf32, #tpu.memory_space<vmem>>) attributes {dimension_semantics = [#tpu.dimension_semantics<parallel>], iteration_bounds = array<i64: 2>, scalar_prefetch = 0 : i64, scratch_operands = 1 : i64, tpu.core_type = #tpu.core_type<tc>, window_params = [{transform_indices = @transform_0, window_bounds = array<i64: 1, 16, 16, 32>}, {transform_indices = @transform_1, window_bounds = array<i64: 1, 16, 16, 32>}, {transform_indices = @transform_2, window_bounds = array<i64: 1, 16, 16, 32>}, {transform_indices = @transform_3, window_bounds = array<i64: 1, 16, 16, 32>}, {pipeline_mode = #tpu.pipeline_mode<synchronous>, transform_indices = @transform_4, window_bounds = array<i64: 288, 128>}, {pipeline_mode = #tpu.pipeline_mode<synchronous>, transform_indices = @transform_5, window_bounds = array<i64: 1, 128>}, {transform_indices = @transform_6, window_bounds = array<i64: 1, 16, 16, 128>}]} {
    %c0 = arith.constant 0 : index
    %c0_0 = arith.constant 0 : index
    %c0_1 = arith.constant 0 : index
    %c0_2 = arith.constant 0 : index
    %0 = vector.load %arg1[%c0, %c0_0, %c0_1, %c0_2] : memref<1x16x16x32xf32, #tpu.memory_space<vmem>>, vector<1x16x16x32xf32>
    %1 = vector.shape_cast %0 : vector<1x16x16x32xf32> to vector<16x16x32xf32>
    %c0_3 = arith.constant 0 : index
    %c0_4 = arith.constant 0 : index
    %c0_5 = arith.constant 0 : index
    %c0_6 = arith.constant 0 : index
    %2 = vector.load %arg2[%c0_3, %c0_4, %c0_5, %c0_6] : memref<1x16x16x32xf32, #tpu.memory_space<vmem>>, vector<1x16x16x32xf32>
    %3 = vector.shape_cast %2 : vector<1x16x16x32xf32> to vector<16x16x32xf32>
    %4 = arith.addf %1, %3 : vector<16x16x32xf32>
    %c0_7 = arith.constant 0 : index
    %c0_8 = arith.constant 0 : index
    %c0_9 = arith.constant 0 : index
    %c0_10 = arith.constant 0 : index
    %5 = vector.load %arg3[%c0_7, %c0_8, %c0_9, %c0_10] : memref<1x16x16x32xf32, #tpu.memory_space<vmem>>, vector<1x16x16x32xf32>
    %6 = vector.shape_cast %5 : vector<1x16x16x32xf32> to vector<16x16x32xf32>
    %7 = arith.addf %4, %6 : vector<16x16x32xf32>
    %c0_11 = arith.constant 0 : index
    %c0_12 = arith.constant 0 : index
    %c0_13 = arith.constant 0 : index
    %c0_14 = arith.constant 0 : index
    %8 = vector.load %arg4[%c0_11, %c0_12, %c0_13, %c0_14] : memref<1x16x16x32xf32, #tpu.memory_space<vmem>>, vector<1x16x16x32xf32>
    %9 = vector.shape_cast %8 : vector<1x16x16x32xf32> to vector<16x16x32xf32>
    %10 = arith.addf %7, %9 : vector<16x16x32xf32>
    %cst = arith.constant 0.000000e+00 : f32
    %11 = vector.broadcast %cst : f32 to vector<18x18x32xf32>
    %c0_15 = arith.constant 0 : index
    %c0_16 = arith.constant 0 : index
    %c0_17 = arith.constant 0 : index
    %12 = vector.load %arg8[%c0_15, %c0_16, %c0_17] : memref<18x18x32xf32, #tpu.memory_space<vmem>>, vector<18x18x32xf32>
    tpu.vector_store %arg8[%c0_15, %c0_16, %c0_17], %11 {strides = array<i32>} : memref<18x18x32xf32, #tpu.memory_space<vmem>>, vector<18x18x32xf32>,
    %c1 = arith.constant 1 : index
    %c1_18 = arith.constant 1 : index
    %c0_19 = arith.constant 0 : index
    %13 = vector.load %arg8[%c1, %c1_18, %c0_19] : memref<18x18x32xf32, #tpu.memory_space<vmem>>, vector<16x16x32xf32>
    tpu.vector_store %arg8[%c1, %c1_18, %c0_19], %10 {strides = array<i32>} : memref<18x18x32xf32, #tpu.memory_space<vmem>>, vector<16x16x32xf32>,
    %cst_20 = arith.constant 0.000000e+00 : f32
    %14 = vector.broadcast %cst_20 : f32 to vector<256x128xf32>
    %c0_21 = arith.constant 0 : index
    %c0_22 = arith.constant 0 : index
    %c0_23 = arith.constant 0 : index
    %15 = vector.load %arg8[%c0_21, %c0_22, %c0_23] : memref<18x18x32xf32, #tpu.memory_space<vmem>>, vector<16x16x32xf32>
    %16 = vector.shape_cast %15 : vector<16x16x32xf32> to vector<256x32xf32>
    %c0_24 = arith.constant 0 : index
    %c0_25 = arith.constant 0 : index
    %17 = vector.load %arg5[%c0_24, %c0_25] : memref<288x128xf32, #tpu.memory_space<vmem>>, vector<32x128xf32>
    %cst_26 = arith.constant dense<0.000000e+00> : vector<256x128xf32>
    %18 = tpu.matmul %16, %17, %cst_26 {dimension_numbers = #tpu.dot_dimension_numbers<[1], [0], [0], [1], [0, 0, 1, 1], [], []>} : vector<256x32xf32>, vector<32x128xf32>, vector<256x128xf32> -> vector<256x128xf32>
    %19 = arith.addf %14, %18 : vector<256x128xf32>
    %c0_27 = arith.constant 0 : index
    %c1_28 = arith.constant 1 : index
    %c0_29 = arith.constant 0 : index
    %20 = vector.load %arg8[%c0_27, %c1_28, %c0_29] : memref<18x18x32xf32, #tpu.memory_space<vmem>>, vector<16x16x32xf32>
    %21 = vector.shape_cast %20 : vector<16x16x32xf32> to vector<256x32xf32>
    %c32 = arith.constant 32 : index
    %c0_30 = arith.constant 0 : index
    %22 = vector.load %arg5[%c32, %c0_30] : memref<288x128xf32, #tpu.memory_space<vmem>>, vector<32x128xf32>
    %cst_31 = arith.constant dense<0.000000e+00> : vector<256x128xf32>
    %23 = tpu.matmul %21, %22, %cst_31 {dimension_numbers = #tpu.dot_dimension_numbers<[1], [0], [0], [1], [0, 0, 1, 1], [], []>} : vector<256x32xf32>, vector<32x128xf32>, vector<256x128xf32> -> vector<256x128xf32>
    %24 = arith.addf %19, %23 : vector<256x128xf32>
    %c0_32 = arith.constant 0 : index
    %c2 = arith.constant 2 : index
    %c0_33 = arith.constant 0 : index
    %25 = vector.load %arg8[%c0_32, %c2, %c0_33] : memref<18x18x32xf32, #tpu.memory_space<vmem>>, vector<16x16x32xf32>
    %26 = vector.shape_cast %25 : vector<16x16x32xf32> to vector<256x32xf32>
    %c64 = arith.constant 64 : index
    %c0_34 = arith.constant 0 : index
    %27 = vector.load %arg5[%c64, %c0_34] : memref<288x128xf32, #tpu.memory_space<vmem>>, vector<32x128xf32>
    %cst_35 = arith.constant dense<0.000000e+00> : vector<256x128xf32>
    %28 = tpu.matmul %26, %27, %cst_35 {dimension_numbers = #tpu.dot_dimension_numbers<[1], [0], [0], [1], [0, 0, 1, 1], [], []>} : vector<256x32xf32>, vector<32x128xf32>, vector<256x128xf32> -> vector<256x128xf32>
    %29 = arith.addf %24, %28 : vector<256x128xf32>
    %c1_36 = arith.constant 1 : index
    %c0_37 = arith.constant 0 : index
    %c0_38 = arith.constant 0 : index
    %30 = vector.load %arg8[%c1_36, %c0_37, %c0_38] : memref<18x18x32xf32, #tpu.memory_space<vmem>>, vector<16x16x32xf32>
    %31 = vector.shape_cast %30 : vector<16x16x32xf32> to vector<256x32xf32>
    %c96 = arith.constant 96 : index
    %c0_39 = arith.constant 0 : index
    %32 = vector.load %arg5[%c96, %c0_39] : memref<288x128xf32, #tpu.memory_space<vmem>>, vector<32x128xf32>
    %cst_40 = arith.constant dense<0.000000e+00> : vector<256x128xf32>
    %33 = tpu.matmul %31, %32, %cst_40 {dimension_numbers = #tpu.dot_dimension_numbers<[1], [0], [0], [1], [0, 0, 1, 1], [], []>} : vector<256x32xf32>, vector<32x128xf32>, vector<256x128xf32> -> vector<256x128xf32>
    %34 = arith.addf %29, %33 : vector<256x128xf32>
    %c1_41 = arith.constant 1 : index
    %c1_42 = arith.constant 1 : index
    %c0_43 = arith.constant 0 : index
    %35 = vector.load %arg8[%c1_41, %c1_42, %c0_43] : memref<18x18x32xf32, #tpu.memory_space<vmem>>, vector<16x16x32xf32>
    %36 = vector.shape_cast %35 : vector<16x16x32xf32> to vector<256x32xf32>
    %c128 = arith.constant 128 : index
    %c0_44 = arith.constant 0 : index
    %37 = vector.load %arg5[%c128, %c0_44] : memref<288x128xf32, #tpu.memory_space<vmem>>, vector<32x128xf32>
    %cst_45 = arith.constant dense<0.000000e+00> : vector<256x128xf32>
    %38 = tpu.matmul %36, %37, %cst_45 {dimension_numbers = #tpu.dot_dimension_numbers<[1], [0], [0], [1], [0, 0, 1, 1], [], []>} : vector<256x32xf32>, vector<32x128xf32>, vector<256x128xf32> -> vector<256x128xf32>
    %39 = arith.addf %34, %38 : vector<256x128xf32>
    %c1_46 = arith.constant 1 : index
    %c2_47 = arith.constant 2 : index
    %c0_48 = arith.constant 0 : index
    %40 = vector.load %arg8[%c1_46, %c2_47, %c0_48] : memref<18x18x32xf32, #tpu.memory_space<vmem>>, vector<16x16x32xf32>
    %41 = vector.shape_cast %40 : vector<16x16x32xf32> to vector<256x32xf32>
    %c160 = arith.constant 160 : index
    %c0_49 = arith.constant 0 : index
    %42 = vector.load %arg5[%c160, %c0_49] : memref<288x128xf32, #tpu.memory_space<vmem>>, vector<32x128xf32>
    %cst_50 = arith.constant dense<0.000000e+00> : vector<256x128xf32>
    %43 = tpu.matmul %41, %42, %cst_50 {dimension_numbers = #tpu.dot_dimension_numbers<[1], [0], [0], [1], [0, 0, 1, 1], [], []>} : vector<256x32xf32>, vector<32x128xf32>, vector<256x128xf32> -> vector<256x128xf32>
    %44 = arith.addf %39, %43 : vector<256x128xf32>
    %c2_51 = arith.constant 2 : index
    %c0_52 = arith.constant 0 : index
    %c0_53 = arith.constant 0 : index
    %45 = vector.load %arg8[%c2_51, %c0_52, %c0_53] : memref<18x18x32xf32, #tpu.memory_space<vmem>>, vector<16x16x32xf32>
    %46 = vector.shape_cast %45 : vector<16x16x32xf32> to vector<256x32xf32>
    %c192 = arith.constant 192 : index
    %c0_54 = arith.constant 0 : index
    %47 = vector.load %arg5[%c192, %c0_54] : memref<288x128xf32, #tpu.memory_space<vmem>>, vector<32x128xf32>
    %cst_55 = arith.constant dense<0.000000e+00> : vector<256x128xf32>
    %48 = tpu.matmul %46, %47, %cst_55 {dimension_numbers = #tpu.dot_dimension_numbers<[1], [0], [0], [1], [0, 0, 1, 1], [], []>} : vector<256x32xf32>, vector<32x128xf32>, vector<256x128xf32> -> vector<256x128xf32>
    %49 = arith.addf %44, %48 : vector<256x128xf32>
    %c2_56 = arith.constant 2 : index
    %c1_57 = arith.constant 1 : index
    %c0_58 = arith.constant 0 : index
    %50 = vector.load %arg8[%c2_56, %c1_57, %c0_58] : memref<18x18x32xf32, #tpu.memory_space<vmem>>, vector<16x16x32xf32>
    %51 = vector.shape_cast %50 : vector<16x16x32xf32> to vector<256x32xf32>
    %c224 = arith.constant 224 : index
    %c0_59 = arith.constant 0 : index
    %52 = vector.load %arg5[%c224, %c0_59] : memref<288x128xf32, #tpu.memory_space<vmem>>, vector<32x128xf32>
    %cst_60 = arith.constant dense<0.000000e+00> : vector<256x128xf32>
    %53 = tpu.matmul %51, %52, %cst_60 {dimension_numbers = #tpu.dot_dimension_numbers<[1], [0], [0], [1], [0, 0, 1, 1], [], []>} : vector<256x32xf32>, vector<32x128xf32>, vector<256x128xf32> -> vector<256x128xf32>
    %54 = arith.addf %49, %53 : vector<256x128xf32>
    %c2_61 = arith.constant 2 : index
    %c2_62 = arith.constant 2 : index
    %c0_63 = arith.constant 0 : index
    %55 = vector.load %arg8[%c2_61, %c2_62, %c0_63] : memref<18x18x32xf32, #tpu.memory_space<vmem>>, vector<16x16x32xf32>
    %56 = vector.shape_cast %55 : vector<16x16x32xf32> to vector<256x32xf32>
    %c256 = arith.constant 256 : index
    %c0_64 = arith.constant 0 : index
    %57 = vector.load %arg5[%c256, %c0_64] : memref<288x128xf32, #tpu.memory_space<vmem>>, vector<32x128xf32>
    %cst_65 = arith.constant dense<0.000000e+00> : vector<256x128xf32>
    %58 = tpu.matmul %56, %57, %cst_65 {dimension_numbers = #tpu.dot_dimension_numbers<[1], [0], [0], [1], [0, 0, 1, 1], [], []>} : vector<256x32xf32>, vector<32x128xf32>, vector<256x128xf32> -> vector<256x128xf32>
    %59 = arith.addf %54, %58 : vector<256x128xf32>
    %c0_66 = arith.constant 0 : index
    %c0_67 = arith.constant 0 : index
    %60 = vector.load %arg6[%c0_66, %c0_67] : memref<1x128xf32, #tpu.memory_space<vmem>>, vector<1x128xf32>
    %61 = vector.broadcast %60 : vector<1x128xf32> to vector<256x128xf32>
    %62 = arith.addf %59, %61 : vector<256x128xf32>
    %63 = vector.shape_cast %62 : vector<256x128xf32> to vector<1x16x16x128xf32>
    %c0_68 = arith.constant 0 : index
    %c0_69 = arith.constant 0 : index
    %c0_70 = arith.constant 0 : index
    %c0_71 = arith.constant 0 : index
    %64 = vector.load %arg7[%c0_68, %c0_69, %c0_70, %c0_71] : memref<1x16x16x128xf32, #tpu.memory_space<vmem>>, vector<1x16x16x128xf32>
    tpu.vector_store %arg7[%c0_68, %c0_69, %c0_70, %c0_71], %63 {strides = array<i32>} : memref<1x16x16x128xf32, #tpu.memory_space<vmem>>, vector<1x16x16x128xf32>,
    return
  }
  func.func @transform_0(%arg0: i32) -> (i32, i32, i32, i32) {
    %c0_i32 = arith.constant 0 : i32
    %c0_i32_0 = arith.constant 0 : i32
    %c0_i32_1 = arith.constant 0 : i32
    %c0_i32_2 = arith.constant 0 : i32
    return %arg0, %c0_i32, %c0_i32_0, %c0_i32_1 : i32, i32, i32, i32
  }
  func.func @transform_1(%arg0: i32) -> (i32, i32, i32, i32) {
    %c0_i32 = arith.constant 0 : i32
    %c0_i32_0 = arith.constant 0 : i32
    %c0_i32_1 = arith.constant 0 : i32
    %c0_i32_2 = arith.constant 0 : i32
    return %arg0, %c0_i32, %c0_i32_0, %c0_i32_1 : i32, i32, i32, i32
  }
  func.func @transform_2(%arg0: i32) -> (i32, i32, i32, i32) {
    %c0_i32 = arith.constant 0 : i32
    %c0_i32_0 = arith.constant 0 : i32
    %c0_i32_1 = arith.constant 0 : i32
    %c0_i32_2 = arith.constant 0 : i32
    return %arg0, %c0_i32, %c0_i32_0, %c0_i32_1 : i32, i32, i32, i32
  }
  func.func @transform_3(%arg0: i32) -> (i32, i32, i32, i32) {
    %c0_i32 = arith.constant 0 : i32
    %c0_i32_0 = arith.constant 0 : i32
    %c0_i32_1 = arith.constant 0 : i32
    %c0_i32_2 = arith.constant 0 : i32
    return %arg0, %c0_i32, %c0_i32_0, %c0_i32_1 : i32, i32, i32, i32
  }
  func.func @transform_4(%arg0: i32) -> (i32, i32) {
    %c0_i32 = arith.constant 0 : i32
    %c0_i32_0 = arith.constant 0 : i32
    %c0_i32_1 = arith.constant 0 : i32
    return %c0_i32, %c0_i32_0 : i32, i32
  }
  func.func @transform_5(%arg0: i32) -> (i32, i32) {
    %c0_i32 = arith.constant 0 : i32
    %c0_i32_0 = arith.constant 0 : i32
    %c0_i32_1 = arith.constant 0 : i32
    return %c0_i32, %c0_i32_0 : i32, i32
  }
  func.func @transform_6(%arg0: i32) -> (i32, i32, i32, i32) {
    %c0_i32 = arith.constant 0 : i32
    %c0_i32_0 = arith.constant 0 : i32
    %c0_i32_1 = arith.constant 0 : i32
    %c0_i32_2 = arith.constant 0 : i32
    return %arg0, %c0_i32, %c0_i32_0, %c0_i32_1 : i32, i32, i32, i32
  }
}

</mosaic_0001>

<bundles_post_ra>
// kernel: tile.8
= control target key start
LH: loop header
LB: loop body
LE: loop exit
PB: predicated region body
PF: predicated region fallthrough
CT: control target
= control target key end

     0   :  { %2 = vsyncpa [#allocation1], 0  ;;  %s51_s8 = smov [#allocation0]   ;;  %s71_s0 = inlined_call_operand.hbm [shape: f32[8], index: 0, kind: input, shape index: {}]   ;;  %s72_s1 = inlined_call_operand.vmem [shape: f32[16,8], index: 1, kind: output, shape index: {}]  }
   0x1   :  { %s8_s0 = sshll.u32 %s71_s0, 4  ;;  %s10_s9 = sshll.u32 %s51_s8, 4  ;;  %s9_s0 = int_to_ptr.hbm [resolvable:$true] %s8_s0  ;;  %s11_s9 = int_to_ptr.vmem [resolvable:$true] %s10_s9 }
   0x2   :  { %13 = dma.hbm_to_vmem [thread:$0]  %s9_s0, 16, %s11_s9, [#allocation1]  }
   0x3   :  { %49 = dma.done.wait [#allocation1], 16  }
   0x4   :  { %50 = vsyncadd [#allocation1], 4294967280  ;;  %v18_v0 = vld [vmem:[#allocation0] ss:$0 sm:$0xff] }
   0x5   :  { %19 = vst [vmem:[%s72_s1] sm:$0xff] %v18_v0 }
   0x6   :  { %23 = vst [vmem:[%s72_s1 + $0x8] sm:$0xff] %v18_v0 }
   0x7   :  { %22 = vsyncpa [#allocation1], 1 }

// kernel: tile.9
= control target key start
LH: loop header
LB: loop body
LE: loop exit
PB: predicated region body
PF: predicated region fallthrough
CT: control target
= control target key end

     0   :  { %s131_s10 = smov 120   ;;  %s132_s11 = smov 104   ;;  %vm3_vm0 = vcmask 64512   ;;  %vm9_vm1 = vcmask 1048512   ;;  %vm15_vm2 = vcmask 982912   ;;  %vm21_vm3 = vcmask 917312   ;;  %s207_s0 = inlined_call_operand.vmem [shape: f32[16,8], index: 0, kind: input, shape index: {}]   ;;  %s208_s1 = inlined_call_operand.vmem [shape: f32[1,128], index: 1, kind: output, shape index: {}]  }
   0x1   :  { %v101_v0 = vld [vmem:[%s207_s0 + $0xf] sm:$0x1]   ;;  %v103_v1 = vld [vmem:[%s207_s0 + $0xd] sm:$0x1]   ;;  %v105_v2 = vld [vmem:[%s207_s0 + $0xb] sm:$0x1]  }
   0x2   :  { %7 = vrot.lane.b32.xlu0 %v101_v0, %s131_s10  ;;  %19 = vrot.lane.b32.xlu1 %v103_v1, %s132_s11  ;;  %s133_s14 = smov 88   ;;  %v102_v3 = vld [vmem:[%s207_s0 + $0xe] sm:$0x1]   ;;  %v104_v4 = vld [vmem:[%s207_s0 + $0xc] sm:$0x1]   ;;  %s134_s19 = smov 112  }
   0x3   :  { %31 = vrot.lane.b32.xlu2 %v105_v2, %s133_s14  ;;  %s135_s20 = smov 96   ;;  %v106_v5 = vld [vmem:[%s207_s0 + $0xa] sm:$0x1]   ;;  %s136_s23 = smov 80   ;;  %v107_v6 = vld [vmem:[%s207_s0 + $0x9] sm:$0x1]  }
   0x4   :  { %v108_v7 = vld [vmem:[%s207_s0 + $0x8] sm:$0x1]   ;;  %s137_s28 = smov 72   ;;  %s138_s29 = smov 64   ;;  %v109_v8 = vld [vmem:[%s207_s0 + $0x7] sm:$0x1]  }
   0x5   :  { %s139_s3 = smov 56   ;;  %v110_v9 = vld [vmem:[%s207_s0 + $0x6] sm:$0x1]   ;;  %v111_v10 = vld [vmem:[%s207_s0 + $0x5] sm:$0x1]   ;;  %s140_s8 = smov 48  }
   0x6   :  { %s141_s9 = smov 40   ;;  %v112_v11 = vld [vmem:[%s207_s0 + $0x4] sm:$0x1]   ;;  %s142_s12 = smov 32   ;;  %v113_v12 = vld [vmem:[%s207_s0 + $0x3] sm:$0x1]  }
   0x7   :  { %v114_v13 = vld [vmem:[%s207_s0 + $0x2] sm:$0x1]   ;;  %s143_s17 = smov 24   ;;  %s144_s18 = smov 16   ;;  %v115_v14 = vld [vmem:[%s207_s0 + $0x1] sm:$0x1]  }
   0x8   :  { %s145_s21 = smov 8   ;;  %v2_v15 = vld [vmem:[%s207_s0] sm:$0x1]   ;;  %vm27_vm4 = vcmask 851712   ;;  %vm33_vm5 = vcmask 786112   ;;  %vm39_vm6 = vcmask 720512  }
   0x9   :  { %4 = vst.msk [vmem:[#allocation0] sm:$0x1] %vm3_vm0, %v2_v15   ;;  %vm45_vm7 = vcmask 654912   ;;  %vm51_vm8 = vcmask 589312   ;;  %vm57_vm9 = vcmask 523712   ;;  %vm63_vm10 = vcmask 458112  }
   0xa   :  { %13 = vrot.lane.b32.xlu0 %v102_v3, %s134_s19  ;;  %25 = vrot.lane.b32.xlu1 %v104_v4, %s135_s20  ;;  %vm69_vm11 = vcmask 392512   ;;  %vm75_vm12 = vcmask 326912   ;;  %vm81_vm13 = vcmask 261312   ;;  %vm87_vm14 = vcmask 195712  }
   0xb   :  { %37 = vrot.lane.b32.xlu2 %v106_v5, %s136_s23  ;;  %vm93_vm15 = vcmask 130112  }
  0x12   :  { %43 = vrot.lane.b32.xlu0 %v107_v6, %s137_s28  ;;  %49 = vrot.lane.b32.xlu1 %v108_v7, %s138_s29 }
  0x13   :  { %55 = vrot.lane.b32.xlu2 %v109_v8, %s139_s3 }
  0x1a   :  { %61 = vrot.lane.b32.xlu0 %v110_v9, %s140_s8  ;;  %67 = vrot.lane.b32.xlu1 %v111_v10, %s141_s9 }
  0x1b   :  { %73 = vrot.lane.b32.xlu2 %v112_v11, %s142_s12 }
  0x22   :  { %79 = vrot.lane.b32.xlu0 %v113_v12, %s143_s17  ;;  %85 = vrot.lane.b32.xlu1 %v114_v13, %s144_s18 }
  0x23   :  { %91 = vrot.lane.b32.xlu2 %v115_v14, %s145_s21 }
  0x5d   :  { %v32_v16 = vpop.permute.xlu2 %31  }
  0x65   :  { %v38_v17 = vpop.permute.xlu2 %37  }
  0x6d   :  { %v56_v18 = vpop.permute.xlu2 %55  }
  0x74   :  { %v8_v19 = vpop.permute.xlu0 %7   ;;  %v20_v20 = vpop.permute.xlu1 %19  }
  0x75   :  { %10 = vst.msk [vmem:[#allocation0] sm:$0x1] %vm9_vm1, %v8_v19   ;;  %v74_v21 = vpop.permute.xlu2 %73  }
  0x7c   :  { %v14_v22 = vpop.permute.xlu0 %13   ;;  %v26_v23 = vpop.permute.xlu1 %25  }
  0x7d   :  { %16 = vst.msk [vmem:[#allocation0] sm:$0x1] %vm15_vm2, %v14_v22   ;;  %v92_v24 = vpop.permute.xlu2 %91  }
  0x7e   :  { %22 = vst.msk [vmem:[#allocation0] sm:$0x1] %vm21_vm3, %v20_v20  }
  0x7f   :  { %28 = vst.msk [vmem:[#allocation0] sm:$0x1] %vm27_vm4, %v26_v23  }
  0x80   :  { %34 = vst.msk [vmem:[#allocation0] sm:$0x1] %vm33_vm5, %v32_v16  }
  0x81   :  { %40 = vst.msk [vmem:[#allocation0] sm:$0x1] %vm39_vm6, %v38_v17  }
  0x84   :  { %v44_v25 = vpop.permute.xlu0 %43   ;;  %v50_v26 = vpop.permute.xlu1 %49  }
  0x85   :  { %46 = vst.msk [vmem:[#allocation0] sm:$0x1] %vm45_vm7, %v44_v25  }
  0x86   :  { %52 = vst.msk [vmem:[#allocation0] sm:$0x1] %vm51_vm8, %v50_v26  }
  0x87   :  { %58 = vst.msk [vmem:[#allocation0] sm:$0x1] %vm57_vm9, %v56_v18  }
  0x8c   :  { %v62_v27 = vpop.permute.xlu0 %61   ;;  %v68_v28 = vpop.permute.xlu1 %67  }
  0x8d   :  { %64 = vst.msk [vmem:[#allocation0] sm:$0x1] %vm63_vm10, %v62_v27  }
  0x8e   :  { %70 = vst.msk [vmem:[#allocation0] sm:$0x1] %vm69_vm11, %v68_v28  }
  0x8f   :  { %76 = vst.msk [vmem:[#allocation0] sm:$0x1] %vm75_vm12, %v74_v21  }
  0x94   :  { %v80_v29 = vpop.permute.xlu0 %79   ;;  %v86_v30 = vpop.permute.xlu1 %85  }
  0x95   :  { %82 = vst.msk [vmem:[#allocation0] sm:$0x1] %vm81_vm13, %v80_v29  }
  0x96   :  { %88 = vst.msk [vmem:[#allocation0] sm:$0x1] %vm87_vm14, %v86_v30  }
  0x97   :  { %94 = vst.msk [vmem:[#allocation0] sm:$0x1] %vm93_vm15, %v92_v24  }
  0x9e   :  { %v97_v31 = vld [vmem:[#allocation0] sm:$0x1] }
  0x9f   :  { %100 = vst [vmem:[%s208_s1] sm:$0x1] %v97_v31 }

</bundles_post_ra>
